<compile_context>
chip_gen: v7x
topology: tpu7x:2x2x1
jax: 0.10.0
libtpu: 0.0.40
codegen_flags: <defaults>
</compile_context>

<pallas_src>
import functools

import jax
import jax.numpy as jnp
from jax import lax
from jax.experimental import pallas as pl
from jax.experimental.pallas import tpu as pltpu


def _round_up(x, m):
    return (x + m - 1) // m * m


def _mlp_kernel(*refs, num_hidden, unroll, use_carry):
    """Fused MLP: relu(fc1) -> num_hidden x relu(hidden) -> relu(fc_last).

    refs (in order):
      x_ref:  (TB, IN_P)  bf16
      w1_ref: (IN_P, H_P) bf16       b1_ref: (1, H_P)    f32
      [wh_ref: (L, H_P, H_P) bf16    bh_ref: (L, 1, H_P) f32]   (if num_hidden > 0)
      wl_ref: (H_P, OUT_P) bf16      bl_ref: (1, OUT_P)  f32
      o_ref:  (TB, OUT_P) f32
      [h_ref: (TB, H_P) bf16 VMEM scratch]                      (if not use_carry)
    """
    it = iter(refs)
    x_ref, w1_ref, b1_ref = next(it), next(it), next(it)
    if num_hidden > 0:
        wh_ref, bh_ref = next(it), next(it)
    wl_ref, bl_ref, o_ref = next(it), next(it), next(it)
    h_ref = next(it) if (num_hidden > 0 and not use_carry) else None

    # fc1 + ReLU (bf16 MXU inputs, f32 accumulation / epilogue).
    h = jnp.dot(x_ref[...], w1_ref[...], preferred_element_type=jnp.float32)
    h = jnp.maximum(h + b1_ref[...], 0.0)
    h_bf = h.astype(jnp.bfloat16)

    # Hidden layers + ReLU; activation stays on-chip between layers.
    if num_hidden > 0:
        if use_carry:
            # Small tile: carry the activation in vregs (no VMEM round trip).
            def body(l, hc):
                a = jnp.dot(hc, wh_ref[l], preferred_element_type=jnp.float32)
                a = jnp.maximum(a + bh_ref[l], 0.0)
                return a.astype(jnp.bfloat16)

            h_bf = lax.fori_loop(0, num_hidden, body, h_bf, unroll=unroll)
        else:
            # Larger tile: keep the activation in a VMEM scratch buffer.
            h_ref[...] = h_bf

            def body(l, carry):
                a = jnp.dot(h_ref[...], wh_ref[l],
                            preferred_element_type=jnp.float32)
                h_ref[...] = jnp.maximum(a + bh_ref[l], 0.0).astype(jnp.bfloat16)
                return carry

            lax.fori_loop(0, num_hidden, body, 0, unroll=unroll)
            h_bf = h_ref[...]

    # fc_last + ReLU.
    y = jnp.dot(h_bf, wl_ref[...], preferred_element_type=jnp.float32)
    o_ref[...] = jnp.maximum(y + bl_ref[...], 0.0).astype(o_ref.dtype)


def _pick_batch_tile(B, IN_P, H_P, OUT_P):
    if B < 16:
        TB = _round_up(B, 8)
    elif B <= 1024:
        # Guarantee >= 2 grid steps so the "parallel" axis can shard across
        # both v7x TensorCores.
        TB = min(512, _round_up(pl.cdiv(B, 2), 8))
    else:
        TB = 512  # large batch: big tiles amortize per-grid-step overhead

    # Keep (double-buffered) activation tiles + scratch inside a modest budget.
    def tile_bytes(tb):
        return 2 * tb * IN_P * 2 + 2 * tb * OUT_P * 4 + tb * H_P * 2

    while TB > 8 and tile_bytes(TB) > (16 << 20):
        TB = max(8, _round_up(TB // 2, 8))
    return TB


def _nn_forward_impl(x, *padded, in_size, out_size, num_hidden, use_buffered):
    if num_hidden > 0:
        w1_p, b1_p, wh_p, bh_p, wl_p, bl_p = padded
    else:
        w1_p, b1_p, wl_p, bl_p = padded
        wh_p = bh_p = None

    IN_P, H_P = w1_p.shape
    OUT_P = wl_p.shape[1]
    B = x.shape[0]
    f32, bf16 = jnp.float32, jnp.bfloat16

    TB = _pick_batch_tile(B, IN_P, H_P, OUT_P)
    B_P = _round_up(B, TB)

    # Per-call: only the activations get padded (weights were padded once).
    x_p = jnp.zeros((B_P, IN_P), bf16).at[:B, :in_size].set(x.astype(bf16))

    use_carry = num_hidden > 0 and (TB * H_P * 2) <= (128 * 1024)
    unroll = max(1, min(num_hidden, 4))

    resident = {"pipeline_mode": pl.Buffered(buffer_count=1)} if use_buffered else {}

    in_specs = [
        pl.BlockSpec((TB, IN_P), lambda i: (i, 0)),                # x tile
        pl.BlockSpec((IN_P, H_P), lambda i: (0, 0), **resident),   # w1 (resident)
        pl.BlockSpec((1, H_P), lambda i: (0, 0), **resident),      # b1
    ]
    args = [x_p, w1_p, b1_p]
    if num_hidden > 0:
        in_specs += [
            pl.BlockSpec((num_hidden, H_P, H_P), lambda i: (0, 0, 0), **resident),
            pl.BlockSpec((num_hidden, 1, H_P), lambda i: (0, 0, 0), **resident),
        ]
        args += [wh_p, bh_p]
    in_specs += [
        pl.BlockSpec((H_P, OUT_P), lambda i: (0, 0), **resident),  # w_last
        pl.BlockSpec((1, OUT_P), lambda i: (0, 0), **resident),    # b_last
    ]
    args += [wl_p, bl_p]

    scratch_shapes = []
    if num_hidden > 0 and not use_carry:
        scratch_shapes.append(pltpu.VMEM((TB, H_P), bf16))

    # VMEM budget: resident weights (x buffer count) + double-buffered
    # activation tiles + scratch, with headroom, clamped to physical VMEM.
    weight_bytes = sum(int(a.size) * a.dtype.itemsize for a in args[1:])
    wbuf = 1 if use_buffered else 2
    tile_bytes = 2 * TB * IN_P * 2 + 2 * TB * OUT_P * 4 + TB * H_P * 2
    needed = weight_bytes * wbuf + tile_bytes
    try:
        phys = int(pltpu.get_tpu_info().vmem_capacity_bytes)
    except Exception:
        phys = 64 << 20  # conservative: v7x per-TensorCore VMEM
    vmem_limit = min(max(needed + (16 << 20), 32 << 20),
                     max(phys - (8 << 20), 32 << 20))

    flops = 2 * B_P * (IN_P * H_P + num_hidden * H_P * H_P + H_P * OUT_P)
    bytes_accessed = int(x_p.size) * 2 + weight_bytes + B_P * OUT_P * 4

    out_p = pl.pallas_call(
        functools.partial(_mlp_kernel, num_hidden=num_hidden,
                          unroll=unroll, use_carry=use_carry),
        out_shape=jax.ShapeDtypeStruct((B_P, OUT_P), f32),
        grid_spec=pltpu.PrefetchScalarGridSpec(
            num_scalar_prefetch=0,
            grid=(B_P // TB,),
            in_specs=in_specs,
            out_specs=pl.BlockSpec((TB, OUT_P), lambda i: (i, 0)),
            scratch_shapes=scratch_shapes,
        ),
        compiler_params=pltpu.CompilerParams(
            dimension_semantics=("parallel",),
            vmem_limit_bytes=int(vmem_limit),
        ),
        cost_estimate=pl.CostEstimate(
            flops=flops, transcendentals=0, bytes_accessed=int(bytes_accessed)),
    )(*args)

    # Slice away batch/feature padding outside the kernel (math is exact).
    return out_p[:B, :out_size]


def prepare_nn_params(params):
    """Pad / stack / cast the weights ONCE (outside the per-call path).

    params: list of (w, b) with w in (in_features, out_features) layout:
      params[0] = fc1, params[1:-1] = hidden layers, params[-1] = fc_last.
    Weights -> bf16 (MXU inputs), biases -> f32 (f32 epilogue).
    Feature dims zero-padded to multiples of 128 (lane-dense; exact through ReLU).
    """
    assert len(params) >= 2
    w1, b1 = params[0]
    wl, bl = params[-1]
    hidden = params[1:-1]
    num_hidden = len(hidden)

    IN, H = w1.shape
    OUT = wl.shape[1]
    assert wl.shape[0] == H

    IN_P, H_P, OUT_P = _round_up(IN, 128), _round_up(H, 128), _round_up(OUT, 128)
    bf16, f32 = jnp.bfloat16, jnp.float32

    w1_p = jnp.zeros((IN_P, H_P), bf16).at[:IN, :H].set(w1.astype(bf16))
    b1_p = jnp.zeros((1, H_P), f32).at[0, :H].set(b1.astype(f32))
    wl_p = jnp.zeros((H_P, OUT_P), bf16).at[:H, :OUT].set(wl.astype(bf16))
    bl_p = jnp.zeros((1, OUT_P), f32).at[0, :OUT].set(bl.astype(f32))

    if num_hidden > 0:
        wh = jnp.stack([w.astype(bf16) for (w, _) in hidden])           # (L, H, H)
        bh = jnp.stack([b.astype(f32)[None, :] for (_, b) in hidden])   # (L, 1, H)
        wh_p = jnp.zeros((num_hidden, H_P, H_P), bf16).at[:, :H, :H].set(wh)
        bh_p = jnp.zeros((num_hidden, 1, H_P), f32).at[:, :, :H].set(bh)
        padded = (w1_p, b1_p, wh_p, bh_p, wl_p, bl_p)
    else:
        padded = (w1_p, b1_p, wl_p, bl_p)

    padded = tuple(jax.device_put(a) for a in padded)
    dims = dict(in_size=IN, out_size=OUT, num_hidden=num_hidden)
    return padded, dims


def make_nn_forward(params):
    """Returns forward(x) with weights pre-padded / cached on device."""
    padded, dims = prepare_nn_params(params)

    def build(use_buffered):
        return jax.jit(functools.partial(_nn_forward_impl,
                                         use_buffered=use_buffered, **dims))

    state = {"fn": build(True)}

    def forward(x):
        try:
            return state["fn"](x, *padded)
        except Exception:
            # Fallback for jax versions without BlockSpec pipeline_mode /
            # single-buffered resident blocks.
            state["fn"] = build(False)
            return state["fn"](x, *padded)

    return forward


def init_nn_params(key, input_size, hidden_layer_size, hidden_layers, output_size):
    """nn.Linear-style init U(-1/sqrt(fan_in), +1/sqrt(fan_in)); weights in (in, out)."""
    params = []
    dims = [input_size] + [hidden_layer_size] * (hidden_layers + 1) + [output_size]
    for i in range(len(dims) - 1):
        fan_in, fan_out = dims[i], dims[i + 1]
        key, kw, kb = jax.random.split(key, 3)
        bound = 1.0 / (fan_in ** 0.5)
        w = jax.random.uniform(kw, (fan_in, fan_out), jnp.float32, -bound, bound)
        b = jax.random.uniform(kb, (fan_out,), jnp.float32, -bound, bound)
        params.append((w, b))
    return params


def nn_forward_ref(x, params, matmul_dtype=jnp.float32):
    """Pure-JAX reference; matmul_dtype=bf16 mimics the kernel's MXU input rounding."""
    h = x.astype(jnp.float32)
    for (w, b) in params:
        a = jnp.dot(h.astype(matmul_dtype).astype(jnp.float32),
                    w.astype(matmul_dtype).astype(jnp.float32),
                    precision=jax.lax.Precision.HIGHEST)
        h = jnp.maximum(a + b.astype(jnp.float32), 0.0)
    return h


if __name__ == "__main__":
    # Small shapes consistent with the module's forward.
    batch = 8
    input_size = 16
    hidden_layer_size = 32
    hidden_layers = 2
    output_size = 8

    key = jax.random.PRNGKey(0)
    kx, kp = jax.random.split(key)
    x = jax.random.normal(kx, (batch, input_size), jnp.float32)
    params = init_nn_params(kp, input_size, hidden_layer_size,
                            hidden_layers, output_size)

    forward = make_nn_forward(params)
    out = jax.block_until_ready(forward(x))

    # bf16-matched reference (same rounding points as the kernel) -> tight check.
    ref_bf16 = nn_forward_ref(x, params, matmul_dtype=jnp.bfloat16)
    # Full-f32 reference -> loose sanity check of the module semantics.
    ref_f32 = nn_forward_ref(x, params, matmul_dtype=jnp.float32)

    assert out.shape == (batch, output_size)
    assert jnp.allclose(out, ref_bf16, atol=1e-3, rtol=1e-3), \
        float(jnp.max(jnp.abs(out - ref_bf16)))
    assert jnp.allclose(out, ref_f32, atol=5e-2, rtol=5e-2), \
        float(jnp.max(jnp.abs(out - ref_f32)))

    print("KERNEL_OK")
</pallas_src>

<mosaic_0001>
module attributes {stable_mosaic.version = 11 : i64} {
  func.func @_mlp_kernel(%arg0: i32, %arg1: memref<8x128xbf16, #tpu.memory_space<vmem>>, %arg2: memref<128x128xbf16, #tpu.memory_space<vmem>>, %arg3: memref<1x128xf32, #tpu.memory_space<vmem>>, %arg4: memref<2x128x128xbf16, #tpu.memory_space<vmem>>, %arg5: memref<2x1x128xf32, #tpu.memory_space<vmem>>, %arg6: memref<128x128xbf16, #tpu.memory_space<vmem>>, %arg7: memref<1x128xf32, #tpu.memory_space<vmem>>, %arg8: memref<8x128xf32, #tpu.memory_space<vmem>>) attributes {dimension_semantics = [#tpu.dimension_semantics<parallel>], iteration_bounds = array<i64: 1>, scalar_prefetch = 0 : i64, scratch_operands = 0 : i64, tpu.core_type = #tpu.core_type<tc>, window_params = [{transform_indices = @transform_0, window_bounds = array<i64: 8, 128>}, {pipeline_mode = #tpu.pipeline_mode<synchronous>, transform_indices = @transform_1, window_bounds = array<i64: 128, 128>}, {pipeline_mode = #tpu.pipeline_mode<synchronous>, transform_indices = @transform_2, window_bounds = array<i64: 1, 128>}, {pipeline_mode = #tpu.pipeline_mode<synchronous>, transform_indices = @transform_3, window_bounds = array<i64: 2, 128, 128>}, {pipeline_mode = #tpu.pipeline_mode<synchronous>, transform_indices = @transform_4, window_bounds = array<i64: 2, 1, 128>}, {pipeline_mode = #tpu.pipeline_mode<synchronous>, transform_indices = @transform_5, window_bounds = array<i64: 128, 128>}, {pipeline_mode = #tpu.pipeline_mode<synchronous>, transform_indices = @transform_6, window_bounds = array<i64: 1, 128>}, {transform_indices = @transform_7, window_bounds = array<i64: 8, 128>}]} {
    %c0 = arith.constant 0 : index
    %c0_0 = arith.constant 0 : index
    %0 = vector.load %arg1[%c0, %c0_0] : memref<8x128xbf16, #tpu.memory_space<vmem>>, vector<8x128xbf16>
    %c0_1 = arith.constant 0 : index
    %c0_2 = arith.constant 0 : index
    %1 = vector.load %arg2[%c0_1, %c0_2] : memref<128x128xbf16, #tpu.memory_space<vmem>>, vector<128x128xbf16>
    %cst = arith.constant dense<0.000000e+00> : vector<8x128xf32>
    %2 = tpu.matmul %0, %1, %cst {dimension_numbers = #tpu.dot_dimension_numbers<[1], [0], [0], [1], [0, 0, 1, 1], [], []>} : vector<8x128xbf16>, vector<128x128xbf16>, vector<8x128xf32> -> vector<8x128xf32>
    %c0_3 = arith.constant 0 : index
    %c0_4 = arith.constant 0 : index
    %3 = vector.load %arg3[%c0_3, %c0_4] : memref<1x128xf32, #tpu.memory_space<vmem>>, vector<1x128xf32>
    %4 = vector.broadcast %3 : vector<1x128xf32> to vector<8x128xf32>
    %5 = arith.addf %2, %4 : vector<8x128xf32>
    %cst_5 = arith.constant 0.000000e+00 : f32
    %6 = vector.broadcast %cst_5 : f32 to vector<8x128xf32>
    %7 = arith.maximumf %5, %6 : vector<8x128xf32>
    %8 = arith.truncf %7 : vector<8x128xf32> to vector<8x128xbf16>
    %c0_i32 = arith.constant 0 : i32
    %9 = arith.index_cast %c0_i32 : i32 to index
    %c0_6 = arith.constant 0 : index
    %c0_7 = arith.constant 0 : index
    %10 = vector.load %arg4[%9, %c0_6, %c0_7] : memref<2x128x128xbf16, #tpu.memory_space<vmem>>, vector<1x128x128xbf16>
    %11 = vector.shape_cast %10 : vector<1x128x128xbf16> to vector<128x128xbf16>
    %cst_8 = arith.constant dense<0.000000e+00> : vector<8x128xf32>
    %12 = tpu.matmul %8, %11, %cst_8 {dimension_numbers = #tpu.dot_dimension_numbers<[1], [0], [0], [1], [0, 0, 1, 1], [], []>} : vector<8x128xbf16>, vector<128x128xbf16>, vector<8x128xf32> -> vector<8x128xf32>
    %13 = arith.index_cast %c0_i32 : i32 to index
    %c0_9 = arith.constant 0 : index
    %c0_10 = arith.constant 0 : index
    %14 = vector.load %arg5[%13, %c0_9, %c0_10] : memref<2x1x128xf32, #tpu.memory_space<vmem>>, vector<1x1x128xf32>
    %15 = vector.shape_cast %14 : vector<1x1x128xf32> to vector<1x128xf32>
    %16 = vector.broadcast %15 : vector<1x128xf32> to vector<8x128xf32>
    %17 = arith.addf %12, %16 : vector<8x128xf32>
    %cst_11 = arith.constant 0.000000e+00 : f32
    %18 = vector.broadcast %cst_11 : f32 to vector<8x128xf32>
    %19 = arith.maximumf %17, %18 : vector<8x128xf32>
    %20 = arith.truncf %19 : vector<8x128xf32> to vector<8x128xbf16>
    %c1_i32 = arith.constant 1 : i32
    %21 = arith.index_cast %c1_i32 : i32 to index
    %c0_12 = arith.constant 0 : index
    %c0_13 = arith.constant 0 : index
    %22 = vector.load %arg4[%21, %c0_12, %c0_13] : memref<2x128x128xbf16, #tpu.memory_space<vmem>>, vector<1x128x128xbf16>
    %23 = vector.shape_cast %22 : vector<1x128x128xbf16> to vector<128x128xbf16>
    %cst_14 = arith.constant dense<0.000000e+00> : vector<8x128xf32>
    %24 = tpu.matmul %20, %23, %cst_14 {dimension_numbers = #tpu.dot_dimension_numbers<[1], [0], [0], [1], [0, 0, 1, 1], [], []>} : vector<8x128xbf16>, vector<128x128xbf16>, vector<8x128xf32> -> vector<8x128xf32>
    %25 = arith.index_cast %c1_i32 : i32 to index
    %c0_15 = arith.constant 0 : index
    %c0_16 = arith.constant 0 : index
    %26 = vector.load %arg5[%25, %c0_15, %c0_16] : memref<2x1x128xf32, #tpu.memory_space<vmem>>, vector<1x1x128xf32>
    %27 = vector.shape_cast %26 : vector<1x1x128xf32> to vector<1x128xf32>
    %28 = vector.broadcast %27 : vector<1x128xf32> to vector<8x128xf32>
    %29 = arith.addf %24, %28 : vector<8x128xf32>
    %cst_17 = arith.constant 0.000000e+00 : f32
    %30 = vector.broadcast %cst_17 : f32 to vector<8x128xf32>
    %31 = arith.maximumf %29, %30 : vector<8x128xf32>
    %32 = arith.truncf %31 : vector<8x128xf32> to vector<8x128xbf16>
    %c2_i32 = arith.constant 2 : i32
    %c0_18 = arith.constant 0 : index
    %c0_19 = arith.constant 0 : index
    %33 = vector.load %arg6[%c0_18, %c0_19] : memref<128x128xbf16, #tpu.memory_space<vmem>>, vector<128x128xbf16>
    %cst_20 = arith.constant dense<0.000000e+00> : vector<8x128xf32>
    %34 = tpu.matmul %32, %33, %cst_20 {dimension_numbers = #tpu.dot_dimension_numbers<[1], [0], [0], [1], [0, 0, 1, 1], [], []>} : vector<8x128xbf16>, vector<128x128xbf16>, vector<8x128xf32> -> vector<8x128xf32>
    %c0_21 = arith.constant 0 : index
    %c0_22 = arith.constant 0 : index
    %35 = vector.load %arg7[%c0_21, %c0_22] : memref<1x128xf32, #tpu.memory_space<vmem>>, vector<1x128xf32>
    %36 = vector.broadcast %35 : vector<1x128xf32> to vector<8x128xf32>
    %37 = arith.addf %34, %36 : vector<8x128xf32>
    %cst_23 = arith.constant 0.000000e+00 : f32
    %38 = vector.broadcast %cst_23 : f32 to vector<8x128xf32>
    %39 = arith.maximumf %37, %38 : vector<8x128xf32>
    %c0_24 = arith.constant 0 : index
    %c0_25 = arith.constant 0 : index
    %40 = vector.load %arg8[%c0_24, %c0_25] : memref<8x128xf32, #tpu.memory_space<vmem>>, vector<8x128xf32>
    tpu.vector_store %arg8[%c0_24, %c0_25], %39 {strides = array<i32>} : memref<8x128xf32, #tpu.memory_space<vmem>>, vector<8x128xf32>,
    return
  }
  func.func @transform_0(%arg0: i32) -> (i32, i32) {
    %c0_i32 = arith.constant 0 : i32
    %c0_i32_0 = arith.constant 0 : i32
    return %arg0, %c0_i32 : i32, i32
  }
  func.func @transform_1(%arg0: i32) -> (i32, i32) {
    %c0_i32 = arith.constant 0 : i32
    %c0_i32_0 = arith.constant 0 : i32
    %c0_i32_1 = arith.constant 0 : i32
    return %c0_i32, %c0_i32_0 : i32, i32
  }
  func.func @transform_2(%arg0: i32) -> (i32, i32) {
    %c0_i32 = arith.constant 0 : i32
    %c0_i32_0 = arith.constant 0 : i32
    %c0_i32_1 = arith.constant 0 : i32
    return %c0_i32, %c0_i32_0 : i32, i32
  }
  func.func @transform_3(%arg0: i32) -> (i32, i32, i32) {
    %c0_i32 = arith.constant 0 : i32
    %c0_i32_0 = arith.constant 0 : i32
    %c0_i32_1 = arith.constant 0 : i32
    %c0_i32_2 = arith.constant 0 : i32
    return %c0_i32, %c0_i32_0, %c0_i32_1 : i32, i32, i32
  }
  func.func @transform_4(%arg0: i32) -> (i32, i32, i32) {
    %c0_i32 = arith.constant 0 : i32
    %c0_i32_0 = arith.constant 0 : i32
    %c0_i32_1 = arith.constant 0 : i32
    %c0_i32_2 = arith.constant 0 : i32
    return %c0_i32, %c0_i32_0, %c0_i32_1 : i32, i32, i32
  }
  func.func @transform_5(%arg0: i32) -> (i32, i32) {
    %c0_i32 = arith.constant 0 : i32
    %c0_i32_0 = arith.constant 0 : i32
    %c0_i32_1 = arith.constant 0 : i32
    return %c0_i32, %c0_i32_0 : i32, i32
  }
  func.func @transform_6(%arg0: i32) -> (i32, i32) {
    %c0_i32 = arith.constant 0 : i32
    %c0_i32_0 = arith.constant 0 : i32
    %c0_i32_1 = arith.constant 0 : i32
    return %c0_i32, %c0_i32_0 : i32, i32
  }
  func.func @transform_7(%arg0: i32) -> (i32, i32) {
    %c0_i32 = arith.constant 0 : i32
    %c0_i32_0 = arith.constant 0 : i32
    return %arg0, %c0_i32 : i32, i32
  }
}

module attributes {stable_mosaic.version = 11 : i64} {
  func.func @_mlp_kernel(%arg0: i32, %arg1: memref<8x128xbf16, #tpu.memory_space<vmem>>, %arg2: memref<128x128xbf16, #tpu.memory_space<vmem>>, %arg3: memref<1x128xf32, #tpu.memory_space<vmem>>, %arg4: memref<2x128x128xbf16, #tpu.memory_space<vmem>>, %arg5: memref<2x1x128xf32, #tpu.memory_space<vmem>>, %arg6: memref<128x128xbf16, #tpu.memory_space<vmem>>, %arg7: memref<1x128xf32, #tpu.memory_space<vmem>>, %arg8: memref<8x128xf32, #tpu.memory_space<vmem>>) attributes {dimension_semantics = [#tpu.dimension_semantics<parallel>], iteration_bounds = array<i64: 1>, scalar_prefetch = 0 : i64, scratch_operands = 0 : i64, tpu.core_type = #tpu.core_type<tc>, window_params = [{transform_indices = @transform_0, window_bounds = array<i64: 8, 128>}, {pipeline_mode = #tpu.pipeline_mode<synchronous>, transform_indices = @transform_1, window_bounds = array<i64: 128, 128>}, {pipeline_mode = #tpu.pipeline_mode<synchronous>, transform_indices = @transform_2, window_bounds = array<i64: 1, 128>}, {pipeline_mode = #tpu.pipeline_mode<synchronous>, transform_indices = @transform_3, window_bounds = array<i64: 2, 128, 128>}, {pipeline_mode = #tpu.pipeline_mode<synchronous>, transform_indices = @transform_4, window_bounds = array<i64: 2, 1, 128>}, {pipeline_mode = #tpu.pipeline_mode<synchronous>, transform_indices = @transform_5, window_bounds = array<i64: 128, 128>}, {pipeline_mode = #tpu.pipeline_mode<synchronous>, transform_indices = @transform_6, window_bounds = array<i64: 1, 128>}, {transform_indices = @transform_7, window_bounds = array<i64: 8, 128>}]} {
    %c0 = arith.constant 0 : index
    %c0_0 = arith.constant 0 : index
    %0 = vector.load %arg1[%c0, %c0_0] : memref<8x128xbf16, #tpu.memory_space<vmem>>, vector<8x128xbf16>
    %c0_1 = arith.constant 0 : index
    %c0_2 = arith.constant 0 : index
    %1 = vector.load %arg2[%c0_1, %c0_2] : memref<128x128xbf16, #tpu.memory_space<vmem>>, vector<128x128xbf16>
    %cst = arith.constant dense<0.000000e+00> : vector<8x128xf32>
    %2 = tpu.matmul %0, %1, %cst {dimension_numbers = #tpu.dot_dimension_numbers<[1], [0], [0], [1], [0, 0, 1, 1], [], []>} : vector<8x128xbf16>, vector<128x128xbf16>, vector<8x128xf32> -> vector<8x128xf32>
    %c0_3 = arith.constant 0 : index
    %c0_4 = arith.constant 0 : index
    %3 = vector.load %arg3[%c0_3, %c0_4] : memref<1x128xf32, #tpu.memory_space<vmem>>, vector<1x128xf32>
    %4 = vector.broadcast %3 : vector<1x128xf32> to vector<8x128xf32>
    %5 = arith.addf %2, %4 : vector<8x128xf32>
    %cst_5 = arith.constant 0.000000e+00 : f32
    %6 = vector.broadcast %cst_5 : f32 to vector<8x128xf32>
    %7 = arith.maximumf %5, %6 : vector<8x128xf32>
    %8 = arith.truncf %7 : vector<8x128xf32> to vector<8x128xbf16>
    %c0_i32 = arith.constant 0 : i32
    %9 = arith.index_cast %c0_i32 : i32 to index
    %c0_6 = arith.constant 0 : index
    %c0_7 = arith.constant 0 : index
    %10 = vector.load %arg4[%9, %c0_6, %c0_7] : memref<2x128x128xbf16, #tpu.memory_space<vmem>>, vector<1x128x128xbf16>
    %11 = vector.shape_cast %10 : vector<1x128x128xbf16> to vector<128x128xbf16>
    %cst_8 = arith.constant dense<0.000000e+00> : vector<8x128xf32>
    %12 = tpu.matmul %8, %11, %cst_8 {dimension_numbers = #tpu.dot_dimension_numbers<[1], [0], [0], [1], [0, 0, 1, 1], [], []>} : vector<8x128xbf16>, vector<128x128xbf16>, vector<8x128xf32> -> vector<8x128xf32>
    %13 = arith.index_cast %c0_i32 : i32 to index
    %c0_9 = arith.constant 0 : index
    %c0_10 = arith.constant 0 : index
    %14 = vector.load %arg5[%13, %c0_9, %c0_10] : memref<2x1x128xf32, #tpu.memory_space<vmem>>, vector<1x1x128xf32>
    %15 = vector.shape_cast %14 : vector<1x1x128xf32> to vector<1x128xf32>
    %16 = vector.broadcast %15 : vector<1x128xf32> to vector<8x128xf32>
    %17 = arith.addf %12, %16 : vector<8x128xf32>
    %cst_11 = arith.constant 0.000000e+00 : f32
    %18 = vector.broadcast %cst_11 : f32 to vector<8x128xf32>
    %19 = arith.maximumf %17, %18 : vector<8x128xf32>
    %20 = arith.truncf %19 : vector<8x128xf32> to vector<8x128xbf16>
    %c1_i32 = arith.constant 1 : i32
    %21 = arith.index_cast %c1_i32 : i32 to index
    %c0_12 = arith.constant 0 : index
    %c0_13 = arith.constant 0 : index
    %22 = vector.load %arg4[%21, %c0_12, %c0_13] : memref<2x128x128xbf16, #tpu.memory_space<vmem>>, vector<1x128x128xbf16>
    %23 = vector.shape_cast %22 : vector<1x128x128xbf16> to vector<128x128xbf16>
    %cst_14 = arith.constant dense<0.000000e+00> : vector<8x128xf32>
    %24 = tpu.matmul %20, %23, %cst_14 {dimension_numbers = #tpu.dot_dimension_numbers<[1], [0], [0], [1], [0, 0, 1, 1], [], []>} : vector<8x128xbf16>, vector<128x128xbf16>, vector<8x128xf32> -> vector<8x128xf32>
    %25 = arith.index_cast %c1_i32 : i32 to index
    %c0_15 = arith.constant 0 : index
    %c0_16 = arith.constant 0 : index
    %26 = vector.load %arg5[%25, %c0_15, %c0_16] : memref<2x1x128xf32, #tpu.memory_space<vmem>>, vector<1x1x128xf32>
    %27 = vector.shape_cast %26 : vector<1x1x128xf32> to vector<1x128xf32>
    %28 = vector.broadcast %27 : vector<1x128xf32> to vector<8x128xf32>
    %29 = arith.addf %24, %28 : vector<8x128xf32>
    %cst_17 = arith.constant 0.000000e+00 : f32
    %30 = vector.broadcast %cst_17 : f32 to vector<8x128xf32>
    %31 = arith.maximumf %29, %30 : vector<8x128xf32>
    %32 = arith.truncf %31 : vector<8x128xf32> to vector<8x128xbf16>
    %c2_i32 = arith.constant 2 : i32
    %c0_18 = arith.constant 0 : index
    %c0_19 = arith.constant 0 : index
    %33 = vector.load %arg6[%c0_18, %c0_19] : memref<128x128xbf16, #tpu.memory_space<vmem>>, vector<128x128xbf16>
    %cst_20 = arith.constant dense<0.000000e+00> : vector<8x128xf32>
    %34 = tpu.matmul %32, %33, %cst_20 {dimension_numbers = #tpu.dot_dimension_numbers<[1], [0], [0], [1], [0, 0, 1, 1], [], []>} : vector<8x128xbf16>, vector<128x128xbf16>, vector<8x128xf32> -> vector<8x128xf32>
    %c0_21 = arith.constant 0 : index
    %c0_22 = arith.constant 0 : index
    %35 = vector.load %arg7[%c0_21, %c0_22] : memref<1x128xf32, #tpu.memory_space<vmem>>, vector<1x128xf32>
    %36 = vector.broadcast %35 : vector<1x128xf32> to vector<8x128xf32>
    %37 = arith.addf %34, %36 : vector<8x128xf32>
    %cst_23 = arith.constant 0.000000e+00 : f32
    %38 = vector.broadcast %cst_23 : f32 to vector<8x128xf32>
    %39 = arith.maximumf %37, %38 : vector<8x128xf32>
    %c0_24 = arith.constant 0 : index
    %c0_25 = arith.constant 0 : index
    %40 = vector.load %arg8[%c0_24, %c0_25] : memref<8x128xf32, #tpu.memory_space<vmem>>, vector<8x128xf32>
    tpu.vector_store %arg8[%c0_24, %c0_25], %39 {strides = array<i32>} : memref<8x128xf32, #tpu.memory_space<vmem>>, vector<8x128xf32>,
    return
  }
  func.func @transform_0(%arg0: i32) -> (i32, i32) {
    %c0_i32 = arith.constant 0 : i32
    %c0_i32_0 = arith.constant 0 : i32
    return %arg0, %c0_i32 : i32, i32
  }
  func.func @transform_1(%arg0: i32) -> (i32, i32) {
    %c0_i32 = arith.constant 0 : i32
    %c0_i32_0 = arith.constant 0 : i32
    %c0_i32_1 = arith.constant 0 : i32
    return %c0_i32, %c0_i32_0 : i32, i32
  }
  func.func @transform_2(%arg0: i32) -> (i32, i32) {
    %c0_i32 = arith.constant 0 : i32
    %c0_i32_0 = arith.constant 0 : i32
    %c0_i32_1 = arith.constant 0 : i32
    return %c0_i32, %c0_i32_0 : i32, i32
  }
  func.func @transform_3(%arg0: i32) -> (i32, i32, i32) {
    %c0_i32 = arith.constant 0 : i32
    %c0_i32_0 = arith.constant 0 : i32
    %c0_i32_1 = arith.constant 0 : i32
    %c0_i32_2 = arith.constant 0 : i32
    return %c0_i32, %c0_i32_0, %c0_i32_1 : i32, i32, i32
  }
  func.func @transform_4(%arg0: i32) -> (i32, i32, i32) {
    %c0_i32 = arith.constant 0 : i32
    %c0_i32_0 = arith.constant 0 : i32
    %c0_i32_1 = arith.constant 0 : i32
    %c0_i32_2 = arith.constant 0 : i32
    return %c0_i32, %c0_i32_0, %c0_i32_1 : i32, i32, i32
  }
  func.func @transform_5(%arg0: i32) -> (i32, i32) {
    %c0_i32 = arith.constant 0 : i32
    %c0_i32_0 = arith.constant 0 : i32
    %c0_i32_1 = arith.constant 0 : i32
    return %c0_i32, %c0_i32_0 : i32, i32
  }
  func.func @transform_6(%arg0: i32) -> (i32, i32) {
    %c0_i32 = arith.constant 0 : i32
    %c0_i32_0 = arith.constant 0 : i32
    %c0_i32_1 = arith.constant 0 : i32
    return %c0_i32, %c0_i32_0 : i32, i32
  }
  func.func @transform_7(%arg0: i32) -> (i32, i32) {
    %c0_i32 = arith.constant 0 : i32
    %c0_i32_0 = arith.constant 0 : i32
    return %arg0, %c0_i32 : i32, i32
  }
}

</mosaic_0001>

<bundles_post_ra>
// kernel: _nn_forward_impl.1
= control target key start
LH: loop header
LB: loop body
LE: loop exit
PB: predicated region body
PF: predicated region fallthrough
CT: control target
= control target key end

     0   :  { %12 = vsyncpa [#allocation3], 0  ;;  %s994_s0 = inlined_call_operand.vmem [shape: bf16[8,128], index: 0, kind: input, shape index: {}]   ;;  %s995_s1 = inlined_call_operand.hbm [shape: bf16[128,128], index: 1, kind: input, shape index: {}]   ;;  %s996_s2 = inlined_call_operand.vmem [shape: f32[1,128], index: 2, kind: input, shape index: {}]   ;;  %s997_s3 = inlined_call_operand.hbm [shape: bf16[2,128,128], index: 3, kind: input, shape index: {}]   ;;  %s998_s4 = inlined_call_operand.vmem [shape: f32[2,1,128], index: 4, kind: input, shape index: {}]   ;;  %s999_s5 = inlined_call_operand.hbm [shape: bf16[128,128], index: 5, kind: input, shape index: {}]   ;;  %s1000_s6 = inlined_call_operand.vmem [shape: f32[1,128], index: 6, kind: input, shape index: {}]   ;;  %s1001_s7 = inlined_call_operand.hbm [shape: f32[8,128], index: 7, kind: output, shape index: {}]  }
   0x1   :  { %13 = vsyncpa [#allocation6], 0 }
   0x2   :  { %14 = vsyncpa [#allocation4], 0  ;;  %s827_s24 = smov [#allocation5]   ;;  %s828_s26 = smov [#allocation2]  }
   0x3   :  { %s36_s25 = sshll.u32 %s827_s24, 4  ;;  %s22_s27 = sshll.u32 %s828_s26, 4  ;;  %s37_s25 = int_to_ptr.vmem [resolvable:$true] %s36_s25  ;;  %s875_s27 = int_to_ptr.vmem [resolvable:$true] %s22_s27 }
   0x4   :  { %s733_s30 = scalar_lea.hbm %s997_s3, 2048 }
   0x5   :  { %p734_p0 = scmp.ne.s32.totalorder %s997_s3, %s733_s30  ;;  %p737_p1 = scmp.lt.u32.totalorder %s733_s30, %s997_s3 }
   0x7   :  { %p739_p2 = pnand %p737_p1, %p734_p0 }
   0x9   :  { %742 = shalt.err (!%p739_p2)
}
   0xa   :  { %s743_s12 = scalar_lea.vmem %s37_s25, 2048  ;;  %p748_p4 = scmp.lt.s32.totalorder %s37_s25, %s37_s25 }
   0xb   :  { %p744_p3 = scmp.ne.s32.totalorder %s37_s25, %s743_s12  ;;  %p749_p5 = scmp.lt.s32.totalorder %s743_s12, %s743_s12 }
   0xd   :  { %p750_p6 = por %p749_p5, %p748_p4 }
   0xf   :  { %p751_p7 = pnand %p750_p6, %p744_p3 }
  0x11   :  { %754 = shalt.err (!%p751_p7)
}
  0x12   :  { %s829_s13 = smov 64   ;;  %s830_s14 = smov 4  }
  0x13   :  { %42 = dma.hbm_to_vmem [thread:$0]  %s997_s3, 2048, %s37_s25, [#allocation6], %s829_s13, %s829_s13, %s830_s14  }
  0x14   :  { %s755_s19 = scalar_lea.hbm %s995_s1, 1024 }
  0x15   :  { %p756_p8 = scmp.ne.s32.totalorder %s995_s1, %s755_s19  ;;  %p759_p9 = scmp.lt.u32.totalorder %s755_s19, %s995_s1 }
  0x17   :  { %p761_p10 = pnand %p759_p9, %p756_p8 }
  0x19   :  { %764 = shalt.err (!%p761_p10)
}
  0x1a   :  { %s765_s24 = scalar_lea.vmem %s875_s27, 1024  ;;  %p770_p12 = scmp.lt.s32.totalorder %s875_s27, %s875_s27 }
  0x1b   :  { %p766_p11 = scmp.ne.s32.totalorder %s875_s27, %s765_s24  ;;  %p771_p13 = scmp.lt.s32.totalorder %s765_s24, %s765_s24 }
  0x1d   :  { %p772_p0 = por %p771_p13, %p770_p12 }
  0x1f   :  { %p773_p1 = pnand %p772_p0, %p766_p11 }
  0x21   :  { %776 = shalt.err (!%p773_p1)
}
  0x22   :  { %28 = dma.hbm_to_vmem [thread:$0]  %s995_s1, 1024, %s875_s27, [#allocation3], %s829_s13, %s829_s13, %s830_s14  }
  0x23   :  { %s831_s26 = smov [#allocation7]   ;;  %s777_s8 = scalar_lea.hbm %s999_s5, 1024 }
  0x24   :  { %s50_s28 = sshll.u32 %s831_s26, 4  ;;  %p778_p2 = scmp.ne.s32.totalorder %s999_s5, %s777_s8  ;;  %s51_s28 = int_to_ptr.vmem [resolvable:$true] %s50_s28 }
  0x25   :  { %p781_p3 = scmp.lt.u32.totalorder %s777_s8, %s999_s5 }
  0x27   :  { %p783_p4 = pnand %p781_p3, %p778_p2 }
  0x29   :  { %786 = shalt.err (!%p783_p4)
}
  0x2a   :  { %s787_s15 = scalar_lea.vmem %s51_s28, 1024  ;;  %p792_p6 = scmp.lt.s32.totalorder %s51_s28, %s51_s28 }
  0x2b   :  { %p788_p5 = scmp.ne.s32.totalorder %s51_s28, %s787_s15  ;;  %p793_p7 = scmp.lt.s32.totalorder %s787_s15, %s787_s15 }
  0x2d   :  { %p794_p8 = por %p793_p7, %p792_p6 }
  0x2f   :  { %p795_p9 = pnand %p794_p8, %p788_p5 }
  0x31   :  { %798 = shalt.err (!%p795_p9)
}
  0x32   :  { %56 = dma.hbm_to_vmem [thread:$0]  %s999_s5, 1024, %s51_s28, [#allocation6], %s829_s13, %s829_s13, %s830_s14  }
  0x33   :  { %821 = dma.done.wait [#allocation3], 1024  }
  0x34   :  { %822 = vsyncadd [#allocation3], 4294966272 }
  0x35   :  { %823 = dma.done.wait [#allocation6], 3072  }
  0x36   :  { %824 = vsyncadd [#allocation6], 4294964224  ;;  %v832_v0 = vmov 0.0   ;;  %vm833_vm0 = vmmov 0   ;;  %v701_v1 = vld [vmem:[#allocation2] sm:$0xff]   ;;  %v702_v2 = vld [vmem:[#allocation2 + $0x8] sm:$0xff]  }
  0x37   :  { %613 = vmatprep.subr.bf16.mxu0 %v832_v0  ;;  %629 = vmatprep.mubr.msk.bf16.mxu0 %vm833_vm0, %v832_v0  ;;  %v703_v3 = vld [vmem:[#allocation2 + $0x10] sm:$0xff]   ;;  %v709_v4 = vld [vmem:[#allocation5] sm:$0xff]   ;;  %v704_v5 = vld [vmem:[#allocation2 + $0x18] sm:$0xff]   ;;  %s834_s21 = smov [#allocation8]  }
  0x38   :  { %633 = vmatprep.subr.bf16.mxu1 %v832_v0  ;;  %649 = vmatprep.mubr.msk.bf16.mxu1 %vm833_vm0, %v832_v0  ;;  %v710_v6 = vld [vmem:[#allocation5 + $0x8] sm:$0xff]   ;;  %v705_v7 = vld [vmem:[#allocation2 + $0x20] sm:$0xff]   ;;  %v711_v8 = vld [vmem:[#allocation5 + $0x10] sm:$0xff]   ;;  %s530_s22 = sshll.u32 %s834_s21, 4  ;;  %s531_s22 = int_to_ptr.vmem [resolvable:$true] %s530_s22 }
  0x39   :  { %614 = vmatpush3.bf16.msra.mxu0 %v701_v1  ;;  %634 = vmatpush3.bf16.msra.mxu1 %v709_v4  ;;  %v706_v9 = vld [vmem:[#allocation2 + $0x28] sm:$0xff]   ;;  %v712_v10 = vld [vmem:[#allocation5 + $0x18] sm:$0xff]   ;;  %v707_v11 = vld [vmem:[#allocation2 + $0x30] sm:$0xff]   ;;  %p804_p11 = scmp.lt.s32.totalorder %s531_s22, %s531_s22 }
  0x3a   :  { %615 = vmatprep.subr.bf16.mxu0 %v832_v0  ;;  %635 = vmatprep.subr.bf16.mxu1 %v832_v0  ;;  %v713_v12 = vld [vmem:[#allocation5 + $0x20] sm:$0xff]   ;;  %v708_v13 = vld [vmem:[#allocation2 + $0x38] sm:$0xff]   ;;  %v714_v14 = vld [vmem:[#allocation5 + $0x28] sm:$0xff]  }
  0x3b   :  { %v69_v15 = vld [vmem:[%s994_s0] sm:$0xf]  ;;  %v715_v16 = vld [vmem:[#allocation5 + $0x30] sm:$0xff]   ;;  %v716_v17 = vld [vmem:[#allocation5 + $0x38] sm:$0xff]  }
  0x3c   :  { %v717_v18 = vld [vmem:[#allocation5 + $0x40] sm:$0xff]   ;;  %v718_v19 = vld [vmem:[#allocation5 + $0x48] sm:$0xff]   ;;  %v719_v20 = vld [vmem:[#allocation5 + $0x50] sm:$0xff]  }
  0x3d   :  { %616 = vmatpush3.bf16.msra.mxu0 %v702_v2  ;;  %636 = vmatpush3.bf16.msra.mxu1 %v710_v6  ;;  %v720_v21 = vld [vmem:[#allocation5 + $0x58] sm:$0xff]   ;;  %v721_v22 = vld [vmem:[#allocation5 + $0x60] sm:$0xff]   ;;  %v722_v23 = vld [vmem:[#allocation5 + $0x68] sm:$0xff]  }
  0x3e   :  { %617 = vmatprep.subr.bf16.mxu0 %v832_v0  ;;  %637 = vmatprep.subr.bf16.mxu1 %v832_v0  ;;  %v540_v24 = vld [vmem:[%s996_s2] ss:$0 sm:$0xff]  ;;  %v723_v32 = vld [vmem:[#allocation5 + $0x70] sm:$0xff]   ;;  %v724_v33 = vld [vmem:[#allocation5 + $0x78] sm:$0xff]  }
  0x3f   :  { %v725_v34 = vld [vmem:[#allocation7] sm:$0xff]   ;;  %v726_v35 = vld [vmem:[#allocation7 + $0x8] sm:$0xff]   ;;  %v727_v36 = vld [vmem:[#allocation7 + $0x10] sm:$0xff]  }
  0x40   :  { %v728_v37 = vld [vmem:[#allocation7 + $0x18] sm:$0xff]   ;;  %v729_v38 = vld [vmem:[#allocation7 + $0x20] sm:$0xff]   ;;  %v730_v39 = vld [vmem:[#allocation7 + $0x28] sm:$0xff]  }
  0x41   :  { %618 = vmatpush3.bf16.msra.mxu0 %v703_v3  ;;  %638 = vmatpush3.bf16.msra.mxu1 %v711_v8  ;;  %v549_v40 = vld [vmem:[%s998_s4] ss:$0 sm:$0xff]  ;;  %v731_v48 = vld [vmem:[#allocation7 + $0x30] sm:$0xff]   ;;  %v732_v49 = vld [vmem:[#allocation7 + $0x38] sm:$0xff]  }
  0x42   :  { %619 = vmatprep.subr.bf16.mxu0 %v832_v0  ;;  %639 = vmatprep.subr.bf16.mxu1 %v832_v0  ;;  %v559_v50 = vld [vmem:[%s998_s4 + $0x1] ss:$0 sm:$0xff]  ;;  %v568_v58 = vld [vmem:[%s1000_s6] ss:$0 sm:$0xff]  ;;  %s799_s4 = scalar_lea.vmem %s531_s22, 128 }
  0x43   :  { %p800_p10 = scmp.ne.s32.totalorder %s531_s22, %s799_s4  ;;  %p805_p12 = scmp.lt.s32.totalorder %s799_s4, %s799_s4 }
  0x45   :  { %620 = vmatpush3.bf16.msra.mxu0 %v704_v5  ;;  %640 = vmatpush3.bf16.msra.mxu1 %v712_v10  ;;  %p806_p13 = por %p805_p12, %p804_p11 }
  0x46   :  { %621 = vmatprep.subr.bf16.mxu0 %v832_v0  ;;  %641 = vmatprep.subr.bf16.mxu1 %v832_v0 }
  0x47   :  { %p807_p0 = pnand %p806_p13, %p800_p10 }
  0x49   :  { %622 = vmatpush3.bf16.msra.mxu0 %v705_v7  ;;  %642 = vmatpush3.bf16.msra.mxu1 %v713_v12 }
  0x4a   :  { %623 = vmatprep.subr.bf16.mxu0 %v832_v0  ;;  %643 = vmatprep.subr.bf16.mxu1 %v832_v0 }
  0x4d   :  { %624 = vmatpush3.bf16.msra.mxu0 %v706_v9  ;;  %644 = vmatpush3.bf16.msra.mxu1 %v714_v14 }
  0x4e   :  { %625 = vmatprep.subr.bf16.mxu0 %v832_v0  ;;  %645 = vmatprep.subr.bf16.mxu1 %v832_v0 }
  0x51   :  { %626 = vmatpush3.bf16.msra.mxu0 %v707_v11  ;;  %646 = vmatpush3.bf16.msra.mxu1 %v715_v16 }
  0x52   :  { %627 = vmatprep.subr.bf16.mxu0 %v832_v0  ;;  %647 = vmatprep.subr.bf16.mxu1 %v832_v0 }
  0x55   :  { %628 = vmatpush3.bf16.msra.mxu0 %v708_v13  ;;  %648 = vmatpush3.bf16.msra.mxu1 %v716_v17 }
  0x56   :  { %653 = vmatprep.subr.bf16.mxu0 %v832_v0  ;;  %673 = vmatprep.subr.bf16.mxu1 %v832_v0 }
  0x58   :  { %630 = vmatmul.mubr.bf16.vlgmr.msra.gmra.mrb[0].mxu0 %v69_v15 }
  0x59   :  { %669 = vmatprep.mubr.msk.bf16.mxu0 %vm833_vm0, %v832_v0  ;;  %654 = vmatpush3.bf16.msra.mxu0 %v717_v18 }
  0x5a   :  { %655 = vmatprep.subr.bf16.mxu0 %v832_v0 }
  0x5d   :  { %656 = vmatpush3.bf16.msra.mxu0 %v718_v19 }
  0x5e   :  { %657 = vmatprep.subr.bf16.mxu0 %v832_v0 }
  0x61   :  { %658 = vmatpush3.bf16.msra.mxu0 %v719_v20 }
  0x62   :  { %659 = vmatprep.subr.bf16.mxu0 %v832_v0 }
  0x65   :  { %660 = vmatpush3.bf16.msra.mxu0 %v720_v21 }
  0x66   :  { %661 = vmatprep.subr.bf16.mxu0 %v832_v0 }
  0x69   :  { %662 = vmatpush3.bf16.msra.mxu0 %v721_v22 }
  0x6a   :  { %663 = vmatprep.subr.bf16.mxu0 %v832_v0 }
  0x6d   :  { %664 = vmatpush3.bf16.msra.mxu0 %v722_v23 }
  0x6e   :  { %665 = vmatprep.subr.bf16.mxu0 %v832_v0 }
  0x71   :  { %666 = vmatpush3.bf16.msra.mxu0 %v723_v32 }
  0x72   :  { %667 = vmatprep.subr.bf16.mxu0 %v832_v0 }
  0x75   :  { %668 = vmatpush3.bf16.msra.mxu0 %v724_v33 }
 0x12b   :  { %v175_v25 = vpop.f32.mrb[0].mxu0 }
 0x12c   :  { %v176_v26 = vadd.f32 %v540_v24, %v175_v25  ;;  %v631_v27 = vpop.f32.mrb[1].mxu0 }
 0x12d   :  { %v178_v28 = vpop.f32.mrb[2].mxu0 }
 0x12e   :  { %v181_v29 = vmax.f32 %v176_v26, 0.0  ;;  %v632_v30 = vpop.f32.mrb[3].mxu0 }
 0x130   :  { %v182_v31 = vpack.c.bf16 %v181_v29, %v181_v29 }
 0x132   :  { %650 = vmatmul.mubr.bf16.vlgmr.msra.gmra.mrb[0].mxu1 %v182_v31 }
 0x133   :  { %689 = vmatprep.mubr.msk.bf16.mxu1 %vm833_vm0, %v832_v0  ;;  %674 = vmatpush3.bf16.msra.mxu1 %v725_v34 }
 0x134   :  { %675 = vmatprep.subr.bf16.mxu1 %v832_v0 }
 0x137   :  { %676 = vmatpush3.bf16.msra.mxu1 %v726_v35 }
 0x138   :  { %677 = vmatprep.subr.bf16.mxu1 %v832_v0 }
 0x13b   :  { %678 = vmatpush3.bf16.msra.mxu1 %v727_v36 }
 0x13c   :  { %679 = vmatprep.subr.bf16.mxu1 %v832_v0 }
 0x13f   :  { %680 = vmatpush3.bf16.msra.mxu1 %v728_v37 }
 0x140   :  { %681 = vmatprep.subr.bf16.mxu1 %v832_v0 }
 0x143   :  { %682 = vmatpush3.bf16.msra.mxu1 %v729_v38 }
 0x144   :  { %683 = vmatprep.subr.bf16.mxu1 %v832_v0 }
 0x147   :  { %684 = vmatpush3.bf16.msra.mxu1 %v730_v39 }
 0x148   :  { %685 = vmatprep.subr.bf16.mxu1 %v832_v0 }
 0x14b   :  { %686 = vmatpush3.bf16.msra.mxu1 %v731_v48 }
 0x14c   :  { %687 = vmatprep.subr.bf16.mxu1 %v832_v0 }
 0x14f   :  { %688 = vmatpush3.bf16.msra.mxu1 %v732_v49 }
 0x205   :  { %v288_v41 = vpop.f32.mrb[0].mxu1 }
 0x206   :  { %v289_v42 = vadd.f32 %v549_v40, %v288_v41  ;;  %v651_v43 = vpop.f32.mrb[1].mxu1 }
 0x207   :  { %v291_v44 = vpop.f32.mrb[2].mxu1 }
 0x208   :  { %v294_v45 = vmax.f32 %v289_v42, 0.0  ;;  %v652_v46 = vpop.f32.mrb[3].mxu1 }
 0x20a   :  { %v295_v47 = vpack.c.bf16 %v294_v45, %v294_v45 }
 0x20c   :  { %670 = vmatmul.mubr.bf16.vlgmr.msra.gmra.mrb[4].mxu0 %v295_v47 }
 0x2df   :  { %v403_v51 = vpop.f32.mrb[4].mxu0 }
 0x2e0   :  { %v404_v52 = vadd.f32 %v559_v50, %v403_v51  ;;  %v671_v53 = vpop.f32.mrb[5].mxu0 }
 0x2e1   :  { %v406_v54 = vpop.f32.mrb[6].mxu0 }
 0x2e2   :  { %v409_v55 = vmax.f32 %v404_v52, 0.0  ;;  %v672_v56 = vpop.f32.mrb[7].mxu0 }
 0x2e4   :  { %v410_v57 = vpack.c.bf16 %v409_v55, %v409_v55 }
 0x2e6   :  { %690 = vmatmul.mubr.bf16.vlgmr.msra.gmra.mrb[4].mxu1 %v410_v57 }
 0x3b9   :  { %v516_v59 = vpop.f32.mrb[4].mxu1 }
 0x3ba   :  { %v517_v60 = vadd.f32 %v568_v58, %v516_v59  ;;  %v691_v61 = vpop.f32.mrb[5].mxu1 }
 0x3bb   :  { %v519_v62 = vpop.f32.mrb[6].mxu1 }
 0x3bc   :  { %v522_v63 = vmax.f32 %v517_v60, 0.0  ;;  %v692_v0 = vpop.f32.mrb[7].mxu1 }
 0x3be   :  { %523 = vst [vmem:[#allocation8] sm:$0xff] %v522_v63 }
 0x3bf   :  { %810 = shalt.err (!%p807_p0)
}
 0x3c0   :  { %s811_s6 = scalar_lea.hbm %s1001_s7, 128 }
 0x3c1   :  { %p812_p1 = scmp.ne.s32.totalorder %s1001_s7, %s811_s6  ;;  %p815_p2 = scmp.lt.u32.totalorder %s811_s6, %s1001_s7 }
 0x3c3   :  { %p817_p3 = pnand %p815_p2, %p812_p1 }
 0x3c5   :  { %820 = shalt.err (!%p817_p3)
}
 0x3c6   :  { %533 = dma.vmem_to_hbm [thread:$0]  %s531_s22, 128, %s1001_s7, [#allocation4]  }
 0x3c7   :  { %825 = dma.done.wait [#allocation4], 128  }
 0x3c8   :  { %826 = vsyncadd [#allocation4], 4294967168 }
 0x3c9   :  { %537 = vsyncpa [#allocation3], 1 }
 0x3ca   :  { %538 = vsyncpa [#allocation6], 1 }
 0x3cb   :  { %539 = vsyncpa [#allocation4], 1 }

// kernel: _nn_forward_impl.1
= control target key start
LH: loop header
LB: loop body
LE: loop exit
PB: predicated region body
PF: predicated region fallthrough
CT: control target
= control target key end

     0   :  { %12 = vsyncpa [#allocation3], 0  ;;  %s994_s0 = inlined_call_operand.vmem [shape: bf16[8,128], index: 0, kind: input, shape index: {}]   ;;  %s995_s1 = inlined_call_operand.hbm [shape: bf16[128,128], index: 1, kind: input, shape index: {}]   ;;  %s996_s2 = inlined_call_operand.vmem [shape: f32[1,128], index: 2, kind: input, shape index: {}]   ;;  %s997_s3 = inlined_call_operand.hbm [shape: bf16[2,128,128], index: 3, kind: input, shape index: {}]   ;;  %s998_s4 = inlined_call_operand.vmem [shape: f32[2,1,128], index: 4, kind: input, shape index: {}]   ;;  %s999_s5 = inlined_call_operand.hbm [shape: bf16[128,128], index: 5, kind: input, shape index: {}]   ;;  %s1000_s6 = inlined_call_operand.vmem [shape: f32[1,128], index: 6, kind: input, shape index: {}]   ;;  %s1001_s7 = inlined_call_operand.hbm [shape: f32[8,128], index: 7, kind: output, shape index: {}]  }
   0x1   :  { %13 = vsyncpa [#allocation6], 0 }
   0x2   :  { %14 = vsyncpa [#allocation4], 0  ;;  %s827_s24 = smov [#allocation5]   ;;  %s828_s26 = smov [#allocation2]  }
   0x3   :  { %s36_s25 = sshll.u32 %s827_s24, 4  ;;  %s22_s27 = sshll.u32 %s828_s26, 4  ;;  %s37_s25 = int_to_ptr.vmem [resolvable:$true] %s36_s25  ;;  %s875_s27 = int_to_ptr.vmem [resolvable:$true] %s22_s27 }
   0x4   :  { %s733_s30 = scalar_lea.hbm %s997_s3, 2048 }
   0x5   :  { %p734_p0 = scmp.ne.s32.totalorder %s997_s3, %s733_s30  ;;  %p737_p1 = scmp.lt.u32.totalorder %s733_s30, %s997_s3 }
   0x7   :  { %p739_p2 = pnand %p737_p1, %p734_p0 }
   0x9   :  { %742 = shalt.err (!%p739_p2)
}
   0xa   :  { %s743_s12 = scalar_lea.vmem %s37_s25, 2048  ;;  %p748_p4 = scmp.lt.s32.totalorder %s37_s25, %s37_s25 }
   0xb   :  { %p744_p3 = scmp.ne.s32.totalorder %s37_s25, %s743_s12  ;;  %p749_p5 = scmp.lt.s32.totalorder %s743_s12, %s743_s12 }
   0xd   :  { %p750_p6 = por %p749_p5, %p748_p4 }
   0xf   :  { %p751_p7 = pnand %p750_p6, %p744_p3 }
  0x11   :  { %754 = shalt.err (!%p751_p7)
}
  0x12   :  { %s829_s13 = smov 64   ;;  %s830_s14 = smov 4  }
  0x13   :  { %42 = dma.hbm_to_vmem [thread:$0]  %s997_s3, 2048, %s37_s25, [#allocation6], %s829_s13, %s829_s13, %s830_s14  }
  0x14   :  { %s755_s19 = scalar_lea.hbm %s995_s1, 1024 }
  0x15   :  { %p756_p8 = scmp.ne.s32.totalorder %s995_s1, %s755_s19  ;;  %p759_p9 = scmp.lt.u32.totalorder %s755_s19, %s995_s1 }
  0x17   :  { %p761_p10 = pnand %p759_p9, %p756_p8 }
  0x19   :  { %764 = shalt.err (!%p761_p10)
}
  0x1a   :  { %s765_s24 = scalar_lea.vmem %s875_s27, 1024  ;;  %p770_p12 = scmp.lt.s32.totalorder %s875_s27, %s875_s27 }
  0x1b   :  { %p766_p11 = scmp.ne.s32.totalorder %s875_s27, %s765_s24  ;;  %p771_p13 = scmp.lt.s32.totalorder %s765_s24, %s765_s24 }
  0x1d   :  { %p772_p0 = por %p771_p13, %p770_p12 }
  0x1f   :  { %p773_p1 = pnand %p772_p0, %p766_p11 }
  0x21   :  { %776 = shalt.err (!%p773_p1)
}
  0x22   :  { %28 = dma.hbm_to_vmem [thread:$0]  %s995_s1, 1024, %s875_s27, [#allocation3], %s829_s13, %s829_s13, %s830_s14  }
  0x23   :  { %s831_s26 = smov [#allocation7]   ;;  %s777_s8 = scalar_lea.hbm %s999_s5, 1024 }
  0x24   :  { %s50_s28 = sshll.u32 %s831_s26, 4  ;;  %p778_p2 = scmp.ne.s32.totalorder %s999_s5, %s777_s8  ;;  %s51_s28 = int_to_ptr.vmem [resolvable:$true] %s50_s28 }
  0x25   :  { %p781_p3 = scmp.lt.u32.totalorder %s777_s8, %s999_s5 }
  0x27   :  { %p783_p4 = pnand %p781_p3, %p778_p2 }
  0x29   :  { %786 = shalt.err (!%p783_p4)
}
  0x2a   :  { %s787_s15 = scalar_lea.vmem %s51_s28, 1024  ;;  %p792_p6 = scmp.lt.s32.totalorder %s51_s28, %s51_s28 }
  0x2b   :  { %p788_p5 = scmp.ne.s32.totalorder %s51_s28, %s787_s15  ;;  %p793_p7 = scmp.lt.s32.totalorder %s787_s15, %s787_s15 }
  0x2d   :  { %p794_p8 = por %p793_p7, %p792_p6 }
  0x2f   :  { %p795_p9 = pnand %p794_p8, %p788_p5 }
  0x31   :  { %798 = shalt.err (!%p795_p9)
}
  0x32   :  { %56 = dma.hbm_to_vmem [thread:$0]  %s999_s5, 1024, %s51_s28, [#allocation6], %s829_s13, %s829_s13, %s830_s14  }
  0x33   :  { %821 = dma.done.wait [#allocation3], 1024  }
  0x34   :  { %822 = vsyncadd [#allocation3], 4294966272 }
  0x35   :  { %823 = dma.done.wait [#allocation6], 3072  }
  0x36   :  { %824 = vsyncadd [#allocation6], 4294964224  ;;  %v832_v0 = vmov 0.0   ;;  %vm833_vm0 = vmmov 0   ;;  %v701_v1 = vld [vmem:[#allocation2] sm:$0xff]   ;;  %v702_v2 = vld [vmem:[#allocation2 + $0x8] sm:$0xff]  }
  0x37   :  { %613 = vmatprep.subr.bf16.mxu0 %v832_v0  ;;  %629 = vmatprep.mubr.msk.bf16.mxu0 %vm833_vm0, %v832_v0  ;;  %v703_v3 = vld [vmem:[#allocation2 + $0x10] sm:$0xff]   ;;  %v709_v4 = vld [vmem:[#allocation5] sm:$0xff]   ;;  %v704_v5 = vld [vmem:[#allocation2 + $0x18] sm:$0xff]   ;;  %s834_s21 = smov [#allocation8]  }
  0x38   :  { %633 = vmatprep.subr.bf16.mxu1 %v832_v0  ;;  %649 = vmatprep.mubr.msk.bf16.mxu1 %vm833_vm0, %v832_v0  ;;  %v710_v6 = vld [vmem:[#allocation5 + $0x8] sm:$0xff]   ;;  %v705_v7 = vld [vmem:[#allocation2 + $0x20] sm:$0xff]   ;;  %v711_v8 = vld [vmem:[#allocation5 + $0x10] sm:$0xff]   ;;  %s530_s22 = sshll.u32 %s834_s21, 4  ;;  %s531_s22 = int_to_ptr.vmem [resolvable:$true] %s530_s22 }
  0x39   :  { %614 = vmatpush3.bf16.msra.mxu0 %v701_v1  ;;  %634 = vmatpush3.bf16.msra.mxu1 %v709_v4  ;;  %v706_v9 = vld [vmem:[#allocation2 + $0x28] sm:$0xff]   ;;  %v712_v10 = vld [vmem:[#allocation5 + $0x18] sm:$0xff]   ;;  %v707_v11 = vld [vmem:[#allocation2 + $0x30] sm:$0xff]   ;;  %p804_p11 = scmp.lt.s32.totalorder %s531_s22, %s531_s22 }
  0x3a   :  { %615 = vmatprep.subr.bf16.mxu0 %v832_v0  ;;  %635 = vmatprep.subr.bf16.mxu1 %v832_v0  ;;  %v713_v12 = vld [vmem:[#allocation5 + $0x20] sm:$0xff]   ;;  %v708_v13 = vld [vmem:[#allocation2 + $0x38] sm:$0xff]   ;;  %v714_v14 = vld [vmem:[#allocation5 + $0x28] sm:$0xff]  }
  0x3b   :  { %v69_v15 = vld [vmem:[%s994_s0] sm:$0xf]  ;;  %v715_v16 = vld [vmem:[#allocation5 + $0x30] sm:$0xff]   ;;  %v716_v17 = vld [vmem:[#allocation5 + $0x38] sm:$0xff]  }
  0x3c   :  { %v717_v18 = vld [vmem:[#allocation5 + $0x40] sm:$0xff]   ;;  %v718_v19 = vld [vmem:[#allocation5 + $0x48] sm:$0xff]   ;;  %v719_v20 = vld [vmem:[#allocation5 + $0x50] sm:$0xff]  }
  0x3d   :  { %616 = vmatpush3.bf16.msra.mxu0 %v702_v2  ;;  %636 = vmatpush3.bf16.msra.mxu1 %v710_v6  ;;  %v720_v21 = vld [vmem:[#allocation5 + $0x58] sm:$0xff]   ;;  %v721_v22 = vld [vmem:[#allocation5 + $0x60] sm:$0xff]   ;;  %v722_v23 = vld [vmem:[#allocation5 + $0x68] sm:$0xff]  }
  0x3e   :  { %617 = vmatprep.subr.bf16.mxu0 %v832_v0  ;;  %637 = vmatprep.subr.bf16.mxu1 %v832_v0  ;;  %v540_v24 = vld [vmem:[%s996_s2] ss:$0 sm:$0xff]  ;;  %v723_v32 = vld [vmem:[#allocation5 + $0x70] sm:$0xff]   ;;  %v724_v33 = vld [vmem:[#allocation5 + $0x78] sm:$0xff]  }
  0x3f   :  { %v725_v34 = vld [vmem:[#allocation7] sm:$0xff]   ;;  %v726_v35 = vld [vmem:[#allocation7 + $0x8] sm:$0xff]   ;;  %v727_v36 = vld [vmem:[#allocation7 + $0x10] sm:$0xff]  }
  0x40   :  { %v728_v37 = vld [vmem:[#allocation7 + $0x18] sm:$0xff]   ;;  %v729_v38 = vld [vmem:[#allocation7 + $0x20] sm:$0xff]   ;;  %v730_v39 = vld [vmem:[#allocation7 + $0x28] sm:$0xff]  }
  0x41   :  { %618 = vmatpush3.bf16.msra.mxu0 %v703_v3  ;;  %638 = vmatpush3.bf16.msra.mxu1 %v711_v8  ;;  %v549_v40 = vld [vmem:[%s998_s4] ss:$0 sm:$0xff]  ;;  %v731_v48 = vld [vmem:[#allocation7 + $0x30] sm:$0xff]   ;;  %v732_v49 = vld [vmem:[#allocation7 + $0x38] sm:$0xff]  }
  0x42   :  { %619 = vmatprep.subr.bf16.mxu0 %v832_v0  ;;  %639 = vmatprep.subr.bf16.mxu1 %v832_v0  ;;  %v559_v50 = vld [vmem:[%s998_s4 + $0x1] ss:$0 sm:$0xff]  ;;  %v568_v58 = vld [vmem:[%s1000_s6] ss:$0 sm:$0xff]  ;;  %s799_s4 = scalar_lea.vmem %s531_s22, 128 }
  0x43   :  { %p800_p10 = scmp.ne.s32.totalorder %s531_s22, %s799_s4  ;;  %p805_p12 = scmp.lt.s32.totalorder %s799_s4, %s799_s4 }
  0x45   :  { %620 = vmatpush3.bf16.msra.mxu0 %v704_v5  ;;  %640 = vmatpush3.bf16.msra.mxu1 %v712_v10  ;;  %p806_p13 = por %p805_p12, %p804_p11 }
  0x46   :  { %621 = vmatprep.subr.bf16.mxu0 %v832_v0  ;;  %641 = vmatprep.subr.bf16.mxu1 %v832_v0 }
  0x47   :  { %p807_p0 = pnand %p806_p13, %p800_p10 }
  0x49   :  { %622 = vmatpush3.bf16.msra.mxu0 %v705_v7  ;;  %642 = vmatpush3.bf16.msra.mxu1 %v713_v12 }
  0x4a   :  { %623 = vmatprep.subr.bf16.mxu0 %v832_v0  ;;  %643 = vmatprep.subr.bf16.mxu1 %v832_v0 }
  0x4d   :  { %624 = vmatpush3.bf16.msra.mxu0 %v706_v9  ;;  %644 = vmatpush3.bf16.msra.mxu1 %v714_v14 }
  0x4e   :  { %625 = vmatprep.subr.bf16.mxu0 %v832_v0  ;;  %645 = vmatprep.subr.bf16.mxu1 %v832_v0 }
  0x51   :  { %626 = vmatpush3.bf16.msra.mxu0 %v707_v11  ;;  %646 = vmatpush3.bf16.msra.mxu1 %v715_v16 }
  0x52   :  { %627 = vmatprep.subr.bf16.mxu0 %v832_v0  ;;  %647 = vmatprep.subr.bf16.mxu1 %v832_v0 }
  0x55   :  { %628 = vmatpush3.bf16.msra.mxu0 %v708_v13  ;;  %648 = vmatpush3.bf16.msra.mxu1 %v716_v17 }
  0x56   :  { %653 = vmatprep.subr.bf16.mxu0 %v832_v0  ;;  %673 = vmatprep.subr.bf16.mxu1 %v832_v0 }
  0x58   :  { %630 = vmatmul.mubr.bf16.vlgmr.msra.gmra.mrb[0].mxu0 %v69_v15 }
  0x59   :  { %669 = vmatprep.mubr.msk.bf16.mxu0 %vm833_vm0, %v832_v0  ;;  %654 = vmatpush3.bf16.msra.mxu0 %v717_v18 }
  0x5a   :  { %655 = vmatprep.subr.bf16.mxu0 %v832_v0 }
  0x5d   :  { %656 = vmatpush3.bf16.msra.mxu0 %v718_v19 }
  0x5e   :  { %657 = vmatprep.subr.bf16.mxu0 %v832_v0 }
  0x61   :  { %658 = vmatpush3.bf16.msra.mxu0 %v719_v20 }
  0x62   :  { %659 = vmatprep.subr.bf16.mxu0 %v832_v0 }
  0x65   :  { %660 = vmatpush3.bf16.msra.mxu0 %v720_v21 }
  0x66   :  { %661 = vmatprep.subr.bf16.mxu0 %v832_v0 }
  0x69   :  { %662 = vmatpush3.bf16.msra.mxu0 %v721_v22 }
  0x6a   :  { %663 = vmatprep.subr.bf16.mxu0 %v832_v0 }
  0x6d   :  { %664 = vmatpush3.bf16.msra.mxu0 %v722_v23 }
  0x6e   :  { %665 = vmatprep.subr.bf16.mxu0 %v832_v0 }
  0x71   :  { %666 = vmatpush3.bf16.msra.mxu0 %v723_v32 }
  0x72   :  { %667 = vmatprep.subr.bf16.mxu0 %v832_v0 }
  0x75   :  { %668 = vmatpush3.bf16.msra.mxu0 %v724_v33 }
 0x12b   :  { %v175_v25 = vpop.f32.mrb[0].mxu0 }
 0x12c   :  { %v176_v26 = vadd.f32 %v540_v24, %v175_v25  ;;  %v631_v27 = vpop.f32.mrb[1].mxu0 }
 0x12d   :  { %v178_v28 = vpop.f32.mrb[2].mxu0 }
 0x12e   :  { %v181_v29 = vmax.f32 %v176_v26, 0.0  ;;  %v632_v30 = vpop.f32.mrb[3].mxu0 }
 0x130   :  { %v182_v31 = vpack.c.bf16 %v181_v29, %v181_v29 }
 0x132   :  { %650 = vmatmul.mubr.bf16.vlgmr.msra.gmra.mrb[0].mxu1 %v182_v31 }
 0x133   :  { %689 = vmatprep.mubr.msk.bf16.mxu1 %vm833_vm0, %v832_v0  ;;  %674 = vmatpush3.bf16.msra.mxu1 %v725_v34 }
 0x134   :  { %675 = vmatprep.subr.bf16.mxu1 %v832_v0 }
 0x137   :  { %676 = vmatpush3.bf16.msra.mxu1 %v726_v35 }
 0x138   :  { %677 = vmatprep.subr.bf16.mxu1 %v832_v0 }
 0x13b   :  { %678 = vmatpush3.bf16.msra.mxu1 %v727_v36 }
 0x13c   :  { %679 = vmatprep.subr.bf16.mxu1 %v832_v0 }
 0x13f   :  { %680 = vmatpush3.bf16.msra.mxu1 %v728_v37 }
 0x140   :  { %681 = vmatprep.subr.bf16.mxu1 %v832_v0 }
 0x143   :  { %682 = vmatpush3.bf16.msra.mxu1 %v729_v38 }
 0x144   :  { %683 = vmatprep.subr.bf16.mxu1 %v832_v0 }
 0x147   :  { %684 = vmatpush3.bf16.msra.mxu1 %v730_v39 }
 0x148   :  { %685 = vmatprep.subr.bf16.mxu1 %v832_v0 }
 0x14b   :  { %686 = vmatpush3.bf16.msra.mxu1 %v731_v48 }
 0x14c   :  { %687 = vmatprep.subr.bf16.mxu1 %v832_v0 }
 0x14f   :  { %688 = vmatpush3.bf16.msra.mxu1 %v732_v49 }
 0x205   :  { %v288_v41 = vpop.f32.mrb[0].mxu1 }
 0x206   :  { %v289_v42 = vadd.f32 %v549_v40, %v288_v41  ;;  %v651_v43 = vpop.f32.mrb[1].mxu1 }
 0x207   :  { %v291_v44 = vpop.f32.mrb[2].mxu1 }
 0x208   :  { %v294_v45 = vmax.f32 %v289_v42, 0.0  ;;  %v652_v46 = vpop.f32.mrb[3].mxu1 }
 0x20a   :  { %v295_v47 = vpack.c.bf16 %v294_v45, %v294_v45 }
 0x20c   :  { %670 = vmatmul.mubr.bf16.vlgmr.msra.gmra.mrb[4].mxu0 %v295_v47 }
 0x2df   :  { %v403_v51 = vpop.f32.mrb[4].mxu0 }
 0x2e0   :  { %v404_v52 = vadd.f32 %v559_v50, %v403_v51  ;;  %v671_v53 = vpop.f32.mrb[5].mxu0 }
 0x2e1   :  { %v406_v54 = vpop.f32.mrb[6].mxu0 }
 0x2e2   :  { %v409_v55 = vmax.f32 %v404_v52, 0.0  ;;  %v672_v56 = vpop.f32.mrb[7].mxu0 }
 0x2e4   :  { %v410_v57 = vpack.c.bf16 %v409_v55, %v409_v55 }
 0x2e6   :  { %690 = vmatmul.mubr.bf16.vlgmr.msra.gmra.mrb[4].mxu1 %v410_v57 }
 0x3b9   :  { %v516_v59 = vpop.f32.mrb[4].mxu1 }
 0x3ba   :  { %v517_v60 = vadd.f32 %v568_v58, %v516_v59  ;;  %v691_v61 = vpop.f32.mrb[5].mxu1 }
 0x3bb   :  { %v519_v62 = vpop.f32.mrb[6].mxu1 }
 0x3bc   :  { %v522_v63 = vmax.f32 %v517_v60, 0.0  ;;  %v692_v0 = vpop.f32.mrb[7].mxu1 }
 0x3be   :  { %523 = vst [vmem:[#allocation8] sm:$0xff] %v522_v63 }
 0x3bf   :  { %810 = shalt.err (!%p807_p0)
}
 0x3c0   :  { %s811_s6 = scalar_lea.hbm %s1001_s7, 128 }
 0x3c1   :  { %p812_p1 = scmp.ne.s32.totalorder %s1001_s7, %s811_s6  ;;  %p815_p2 = scmp.lt.u32.totalorder %s811_s6, %s1001_s7 }
 0x3c3   :  { %p817_p3 = pnand %p815_p2, %p812_p1 }
 0x3c5   :  { %820 = shalt.err (!%p817_p3)
}
 0x3c6   :  { %533 = dma.vmem_to_hbm [thread:$0]  %s531_s22, 128, %s1001_s7, [#allocation4]  }
 0x3c7   :  { %825 = dma.done.wait [#allocation4], 128  }
 0x3c8   :  { %826 = vsyncadd [#allocation4], 4294967168 }
 0x3c9   :  { %537 = vsyncpa [#allocation3], 1 }
 0x3ca   :  { %538 = vsyncpa [#allocation6], 1 }
 0x3cb   :  { %539 = vsyncpa [#allocation4], 1 }

</bundles_post_ra>
